<compile_context>
chip_gen: v7x
topology: tpu7x:2x2x1
jax: 0.10.0
libtpu: 0.0.40
codegen_flags: <defaults>
</compile_context>

<pallas_src>
import jax
import jax.numpy as jnp
from jax.experimental import pallas as pl
from jax.experimental.pallas import tpu as pltpu


def _ensemble_kernel(x_ref, h_ref, we_ref, be_ref, wih_ref, whh_ref, brnn_ref,
                     out_ref):
    # Single invocation: everything already resident in VMEM.
    x = x_ref[...]                                      # (B, D_in)
    h = h_ref[...]                                      # (B, M*H)

    # Encoder for ALL members at once: (B, D_in) @ (D_in, M*E) -> (B, M*E)
    enc = jnp.tanh(
        jnp.dot(x, we_ref[...], preferred_element_type=jnp.float32)
        + be_ref[...]
    )

    # RNN cell for ALL members at once via block-diagonal weights:
    #   (B, M*E) @ (M*E, M*H)  +  (B, M*H) @ (M*H, M*H)  +  (1, M*H)
    pre = (jnp.dot(enc, wih_ref[...], preferred_element_type=jnp.float32)
           + jnp.dot(h, whh_ref[...], preferred_element_type=jnp.float32)
           + brnn_ref[...])
    out_ref[...] = jnp.tanh(pre)                        # (B, M*H) lane-dense


def _block_diag(w):
    """(M, A, B) -> (M*A, M*B) block-diagonal matrix (done in the wrapper)."""
    M, A, Bd = w.shape
    eye = jnp.eye(M, dtype=w.dtype)
    return jnp.einsum('mab,mn->manb', w, eye).reshape(M * A, M * Bd)


def ensemble_forward(x, hidden, params):
    """x: (B, D_in) f32; hidden: (1, B, H, M) f32.
    Returns (new_output (B,1,H,M), new_hidden (1,B,H,M))."""
    We, be, Wih, bih, Whh, bhh = params
    M, D_in, E = We.shape
    H = Whh.shape[-1]
    B = x.shape[0]

    # ---- pack the ensemble (M) axis into lanes, once, outside the kernel ----
    # Encoder: (M, D_in, E) -> (D_in, M*E); bias (M,1,E) -> (1, M*E)
    We_cat = jnp.transpose(We, (1, 0, 2)).reshape(D_in, M * E)
    be_cat = be[:, 0, :].reshape(1, M * E)
    # RNN: block-diagonal (M*E, M*H) and (M*H, M*H); fused bias (1, M*H)
    Wih_bd = _block_diag(Wih)
    Whh_bd = _block_diag(Whh)
    b_rnn = (bih[:, 0, :] + bhh[:, 0, :]).reshape(1, M * H)
    # hidden (1, B, H, M) -> (B, M*H) with model m in lanes [m*H, (m+1)*H)
    h_cat = jnp.transpose(hidden[0], (0, 2, 1)).reshape(B, M * H)

    # Single grid-less pallas_call: whole arrays as VMEM blocks (~66 KB total).
    h_new_cat = pl.pallas_call(
        _ensemble_kernel,
        out_shape=jax.ShapeDtypeStruct((B, M * H), jnp.float32),
    )(x, h_cat, We_cat, be_cat, Wih_bd, Whh_bd, b_rnn)

    # (B, M*H) -> (B, M, H) -> (B, H, M); build both PyTorch views.
    h_new = jnp.transpose(h_new_cat.reshape(B, M, H), (0, 2, 1))
    new_output = h_new[:, None, :, :]     # (B, 1, H, M)
    new_hidden = h_new[None, :, :, :]     # (1, B, H, M)
    return new_output, new_hidden


def make_params(key, M, D_in, E, H):
    ks = jax.random.split(key, 6)
    s = 0.1
    We = s * jax.random.normal(ks[0], (M, D_in, E), jnp.float32)
    be = s * jax.random.normal(ks[1], (M, 1, E), jnp.float32)
    Wih = s * jax.random.normal(ks[2], (M, E, H), jnp.float32)
    bih = s * jax.random.normal(ks[3], (M, 1, H), jnp.float32)
    Whh = s * jax.random.normal(ks[4], (M, H, H), jnp.float32)
    bhh = s * jax.random.normal(ks[5], (M, 1, H), jnp.float32)
    return We, be, Wih, bih, Whh, bhh


def reference_forward(x, hidden, params):
    """Pure-JAX reference, mirroring the PyTorch loop."""
    We, be, Wih, bih, Whh, bhh = params
    M = hidden.shape[3]
    outs, hids = [], []
    for i in range(M):
        enc = jnp.tanh(x @ We[i] + be[i][0])
        h_in = hidden[0, :, :, i]
        h_new = jnp.tanh(enc @ Wih[i] + bih[i][0] + h_in @ Whh[i] + bhh[i][0])
        outs.append(h_new[:, None, :, None])
        hids.append(h_new[None, :, :, None])
    return jnp.concatenate(outs, axis=3), jnp.concatenate(hids, axis=3)


if __name__ == "__main__":
    B, D_in, E, H, M = 2, 32, 32, 32, 4

    key = jax.random.PRNGKey(0)
    k_x, k_h, k_p = jax.random.split(key, 3)
    x = jax.random.normal(k_x, (B, D_in), jnp.float32)
    hidden = jax.random.normal(k_h, (1, B, H, M), jnp.float32)
    params = make_params(k_p, M, D_in, E, H)

    new_output, new_hidden = jax.jit(ensemble_forward)(x, hidden, params)
    jax.block_until_ready((new_output, new_hidden))

    ref_out, ref_hid = reference_forward(x, hidden, params)
    assert new_output.shape == (B, 1, H, M)
    assert new_hidden.shape == (1, B, H, M)
    assert jnp.allclose(new_output, ref_out, atol=1e-5, rtol=1e-5)
    assert jnp.allclose(new_hidden, ref_hid, atol=1e-5, rtol=1e-5)

    print("KERNEL_OK")
</pallas_src>

<mosaic_0001>
module attributes {stable_mosaic.version = 11 : i64} {
  func.func @_ensemble_kernel(%arg0: memref<2x32xf32, #tpu.memory_space<vmem>>, %arg1: memref<2x128xf32, #tpu.memory_space<vmem>>, %arg2: memref<32x128xf32, #tpu.memory_space<vmem>>, %arg3: memref<1x128xf32, #tpu.memory_space<vmem>>, %arg4: memref<128x128xf32, #tpu.memory_space<vmem>>, %arg5: memref<128x128xf32, #tpu.memory_space<vmem>>, %arg6: memref<1x128xf32, #tpu.memory_space<vmem>>, %arg7: memref<2x128xf32, #tpu.memory_space<vmem>>) attributes {dimension_semantics = [], scalar_prefetch = 0 : i64, scratch_operands = 0 : i64, tpu.core_type = #tpu.core_type<tc>} {
    %c0 = arith.constant 0 : index
    %c0_0 = arith.constant 0 : index
    %0 = vector.load %arg0[%c0, %c0_0] : memref<2x32xf32, #tpu.memory_space<vmem>>, vector<2x32xf32>
    %c0_1 = arith.constant 0 : index
    %c0_2 = arith.constant 0 : index
    %1 = vector.load %arg1[%c0_1, %c0_2] : memref<2x128xf32, #tpu.memory_space<vmem>>, vector<2x128xf32>
    %c0_3 = arith.constant 0 : index
    %c0_4 = arith.constant 0 : index
    %2 = vector.load %arg2[%c0_3, %c0_4] : memref<32x128xf32, #tpu.memory_space<vmem>>, vector<32x128xf32>
    %cst = arith.constant dense<0.000000e+00> : vector<2x128xf32>
    %3 = tpu.matmul %0, %2, %cst {dimension_numbers = #tpu.dot_dimension_numbers<[1], [0], [0], [1], [0, 0, 1, 1], [], []>} : vector<2x32xf32>, vector<32x128xf32>, vector<2x128xf32> -> vector<2x128xf32>
    %c0_5 = arith.constant 0 : index
    %c0_6 = arith.constant 0 : index
    %4 = vector.load %arg3[%c0_5, %c0_6] : memref<1x128xf32, #tpu.memory_space<vmem>>, vector<1x128xf32>
    %5 = vector.broadcast %4 : vector<1x128xf32> to vector<2x128xf32>
    %6 = arith.addf %3, %5 : vector<2x128xf32>
    %7 = math.tanh %6 : vector<2x128xf32>
    %c0_7 = arith.constant 0 : index
    %c0_8 = arith.constant 0 : index
    %8 = vector.load %arg4[%c0_7, %c0_8] : memref<128x128xf32, #tpu.memory_space<vmem>>, vector<128x128xf32>
    %cst_9 = arith.constant dense<0.000000e+00> : vector<2x128xf32>
    %9 = tpu.matmul %7, %8, %cst_9 {dimension_numbers = #tpu.dot_dimension_numbers<[1], [0], [0], [1], [0, 0, 1, 1], [], []>} : vector<2x128xf32>, vector<128x128xf32>, vector<2x128xf32> -> vector<2x128xf32>
    %c0_10 = arith.constant 0 : index
    %c0_11 = arith.constant 0 : index
    %10 = vector.load %arg5[%c0_10, %c0_11] : memref<128x128xf32, #tpu.memory_space<vmem>>, vector<128x128xf32>
    %cst_12 = arith.constant dense<0.000000e+00> : vector<2x128xf32>
    %11 = tpu.matmul %1, %10, %cst_12 {dimension_numbers = #tpu.dot_dimension_numbers<[1], [0], [0], [1], [0, 0, 1, 1], [], []>} : vector<2x128xf32>, vector<128x128xf32>, vector<2x128xf32> -> vector<2x128xf32>
    %12 = arith.addf %9, %11 : vector<2x128xf32>
    %c0_13 = arith.constant 0 : index
    %c0_14 = arith.constant 0 : index
    %13 = vector.load %arg6[%c0_13, %c0_14] : memref<1x128xf32, #tpu.memory_space<vmem>>, vector<1x128xf32>
    %14 = vector.broadcast %13 : vector<1x128xf32> to vector<2x128xf32>
    %15 = arith.addf %12, %14 : vector<2x128xf32>
    %16 = math.tanh %15 : vector<2x128xf32>
    %c0_15 = arith.constant 0 : index
    %c0_16 = arith.constant 0 : index
    %17 = vector.load %arg7[%c0_15, %c0_16] : memref<2x128xf32, #tpu.memory_space<vmem>>, vector<2x128xf32>
    tpu.vector_store %arg7[%c0_15, %c0_16], %16 {strides = array<i32>} : memref<2x128xf32, #tpu.memory_space<vmem>>, vector<2x128xf32>,
    return
  }
}

</mosaic_0001>

<bundles_post_ra>
// kernel: squeeze.4
= control target key start
LH: loop header
LB: loop body
LE: loop exit
PB: predicated region body
PF: predicated region fallthrough
CT: control target
= control target key end

     0   :  { %vm7_vm0 = vcmask 261120   ;;  %s37_s8 = smov 32   ;;  %s38_s9 = smov 64   ;;  %vm13_vm1 = vcmask 1048320   ;;  %vm19_vm2 = vcmask 785920   ;;  %vm25_vm3 = vcmask 523520   ;;  %s55_s0 = inlined_call_operand.vmem [shape: f32[4,32], index: 0, kind: input, shape index: {}]   ;;  %s56_s1 = inlined_call_operand.vmem [shape: f32[1,128], index: 1, kind: output, shape index: {}]  }
   0x1   :  { %v4_v0 = vld [vmem:[%s55_s0] sm:$0xf]  ;;  %s36_s0 = smov 96  }
   0x2   :  { %5 = vst [vmem:[#allocation1] sm:$0xf] %v4_v0 }
   0x9   :  { %v10_v1 = vld [vmem:[#allocation1 + $0x3] sm:$0x1]   ;;  %v22_v2 = vld [vmem:[#allocation1 + $0x1] sm:$0x1]   ;;  %v6_v3 = vld [vmem:[#allocation1] sm:$0x1]  }
   0xa   :  { %11 = vrot.lane.b32.xlu0 %v10_v1, %s36_s0  ;;  %23 = vrot.lane.b32.xlu1 %v22_v2, %s37_s8  ;;  %v16_v4 = vld [vmem:[#allocation1 + $0x2] sm:$0x1]   ;;  %8 = vst.msk [vmem:[#allocation0] sm:$0x1] %vm7_vm0, %v6_v3  }
   0xe   :  { %17 = vrot.lane.b32.xlu0 %v16_v4, %s38_s9 }
  0x7c   :  { %v12_v5 = vpop.permute.xlu0 %11   ;;  %v24_v6 = vpop.permute.xlu1 %23  }
  0x7d   :  { %14 = vst.msk [vmem:[#allocation0] sm:$0x1] %vm13_vm1, %v12_v5  }
  0x80   :  { %v18_v7 = vpop.permute.xlu0 %17  }
  0x81   :  { %20 = vst.msk [vmem:[#allocation0] sm:$0x1] %vm19_vm2, %v18_v7  }
  0x82   :  { %26 = vst.msk [vmem:[#allocation0] sm:$0x1] %vm25_vm3, %v24_v6  }
  0x89   :  { %v30_v8 = vld [vmem:[#allocation0] sm:$0x1] }
  0x8a   :  { %32 = vst [vmem:[%s56_s1] sm:$0x1] %v30_v8 }

// kernel: ensemble_forward.1
= control target key start
LH: loop header
LB: loop body
LE: loop exit
PB: predicated region body
PF: predicated region fallthrough
CT: control target
= control target key end

     0   :  { %v484_v0 = vmov 0.0|0.0   ;;  %vm485_vm0 = vmmov 0   ;;  %v486_v4 = vmov 0.0   ;;  %vm39_vm1 = vcmask 261120   ;;  %s671_s2 = inlined_call_operand.vmem [shape: f32[32,128], index: 2, kind: input, shape index: {}]   ;;  %s672_s5 = inlined_call_operand.vmem [shape: f32[128,128], index: 5, kind: input, shape index: {}]   ;;  %s673_s4 = inlined_call_operand.vmem [shape: f32[128,128], index: 4, kind: input, shape index: {}]   ;;  %s674_s0 = inlined_call_operand.vmem [shape: f32[2,32], index: 0, kind: input, shape index: {}]   ;;  %s675_s1 = inlined_call_operand.vmem [shape: f32[2,128], index: 1, kind: input, shape index: {}]   ;;  %s676_s3 = inlined_call_operand.vmem [shape: f32[1,128], index: 3, kind: input, shape index: {}]   ;;  %s677_s6 = inlined_call_operand.vmem [shape: f32[1,128], index: 6, kind: input, shape index: {}]   ;;  %s678_s7 = inlined_call_operand.vmem [shape: f32[2,128], index: 7, kind: output, shape index: {}]  }
   0x1   :  { %423 = vmatprep.subr.bf16.mxu0 %v484_v0  ;;  %v28_v1 = vld [vmem:[%s671_s2] sm:$0xff]  ;;  %v29_v2 = vld [vmem:[%s671_s2 + $0x8] sm:$0xff]  ;;  %v30_v3 = vld [vmem:[%s671_s2 + $0x10] sm:$0xff]  ;;  %350 = vmatprep.mubr.msk.f32.mxu0 %vm485_vm0, %v486_v4 }
   0x2   :  { %v424_v5 = vpack.c.bf16 %v29_v2, %v28_v1  ;;  %v31_v6 = vld [vmem:[%s671_s2 + $0x18] sm:$0xff]  ;;  %429 = vmatprep.subr.bf16.mxu1 %v484_v0  ;;  %v130_v7 = vld [vmem:[%s672_s5] sm:$0xff]  ;;  %385 = vmatprep.mubr.msk.f32.mxu1 %vm485_vm0, %v486_v4  ;;  %v131_v8 = vld [vmem:[%s672_s5 + $0x8] sm:$0xff] }
   0x3   :  { %v427_v9 = vpack.c.bf16 %v31_v6, %v30_v3  ;;  %v430_v10 = vpack.c.bf16 %v131_v8, %v130_v7  ;;  %v132_v11 = vld [vmem:[%s672_s5 + $0x10] sm:$0xff]  ;;  %v133_v12 = vld [vmem:[%s672_s5 + $0x18] sm:$0xff]  ;;  %v114_v13 = vld [vmem:[%s673_s4] sm:$0xff] }
   0x4   :  { %425 = vmatpush3.bf16.msra.mxu0 %v424_v5  ;;  %v115_v14 = vld [vmem:[%s673_s4 + $0x8] sm:$0xff]  ;;  %v433_v15 = vpack.c.bf16 %v133_v12, %v132_v11  ;;  %v134_v16 = vld [vmem:[%s672_s5 + $0x20] sm:$0xff]  ;;  %v116_v20 = vld [vmem:[%s673_s4 + $0x10] sm:$0xff] }
   0x5   :  { %426 = vmatprep.subr.bf16.mxu0 %v484_v0  ;;  %431 = vmatpush3.bf16.msra.mxu1 %v430_v10  ;;  %v135_v17 = vld [vmem:[%s672_s5 + $0x28] sm:$0xff]  ;;  %v26_v18 = vld [vmem:[%s674_s0] sm:$0x3]  ;;  %v454_v19 = vpack.c.bf16 %v115_v14, %v114_v13  ;;  %v117_v21 = vld [vmem:[%s673_s4 + $0x18] sm:$0xff] }
   0x6   :  { %432 = vmatprep.subr.bf16.mxu1 %v484_v0  ;;  %v436_v22 = vpack.c.bf16 %v135_v17, %v134_v16  ;;  %v136_v23 = vld [vmem:[%s672_s5 + $0x30] sm:$0xff]  ;;  %v137_v24 = vld [vmem:[%s672_s5 + $0x38] sm:$0xff]  ;;  %v457_v25 = vpack.c.bf16 %v117_v21, %v116_v20  ;;  %v118_v26 = vld [vmem:[%s673_s4 + $0x20] sm:$0xff] }
   0x7   :  { %v119_v27 = vld [vmem:[%s673_s4 + $0x28] sm:$0xff]  ;;  %v439_v28 = vpack.c.bf16 %v137_v24, %v136_v23  ;;  %v138_v29 = vld [vmem:[%s672_s5 + $0x40] sm:$0xff]  ;;  %v120_v32 = vld [vmem:[%s673_s4 + $0x30] sm:$0xff] }
   0x8   :  { %428 = vmatpush3.bf16.msra.mxu0 %v427_v9  ;;  %v139_v30 = vld [vmem:[%s672_s5 + $0x48] sm:$0xff]  ;;  %v460_v31 = vpack.c.bf16 %v119_v27, %v118_v26  ;;  %v121_v33 = vld [vmem:[%s673_s4 + $0x38] sm:$0xff]  ;;  %v122_v36 = vld [vmem:[%s673_s4 + $0x40] sm:$0xff] }
   0x9   :  { %453 = vmatprep.subr.bf16.mxu0 %v484_v0  ;;  %434 = vmatpush3.bf16.msra.mxu1 %v433_v15  ;;  %v442_v34 = vpack.c.bf16 %v139_v30, %v138_v29  ;;  %v463_v35 = vpack.c.bf16 %v121_v33, %v120_v32  ;;  %v123_v37 = vld [vmem:[%s673_s4 + $0x48] sm:$0xff]  ;;  %v140_v39 = vld [vmem:[%s672_s5 + $0x50] sm:$0xff]  ;;  %v141_v40 = vld [vmem:[%s672_s5 + $0x58] sm:$0xff] }
   0xa   :  { %435 = vmatprep.subr.bf16.mxu1 %v484_v0  ;;  %v466_v38 = vpack.c.bf16 %v123_v37, %v122_v36  ;;  %v445_v41 = vpack.c.bf16 %v141_v40, %v140_v39  ;;  %v124_v42 = vld [vmem:[%s673_s4 + $0x50] sm:$0xff]  ;;  %v125_v43 = vld [vmem:[%s673_s4 + $0x58] sm:$0xff]  ;;  %v142_v45 = vld [vmem:[%s672_s5 + $0x60] sm:$0xff] }
   0xb   :  { %351 = vmatmul.mubr.msk.f32.vlgmr.msra.gmra.mrb[0].mxu0 %vm39_vm1, %v26_v18  ;;  %v469_v44 = vpack.c.bf16 %v125_v43, %v124_v42  ;;  %v143_v46 = vld [vmem:[%s672_s5 + $0x68] sm:$0xff]  ;;  %v126_v47 = vld [vmem:[%s673_s4 + $0x60] sm:$0xff]  ;;  %v144_v50 = vld [vmem:[%s672_s5 + $0x70] sm:$0xff] }
   0xc   :  { %455 = vmatpush3.bf16.msra.mxu0 %v454_v19  ;;  %420 = vmatprep.mubr.msk.f32.mxu0 %vm485_vm0, %v486_v4  ;;  %v448_v48 = vpack.c.bf16 %v143_v46, %v142_v45  ;;  %v127_v49 = vld [vmem:[%s673_s4 + $0x68] sm:$0xff]  ;;  %v145_v51 = vld [vmem:[%s672_s5 + $0x78] sm:$0xff]  ;;  %v128_v53 = vld [vmem:[%s673_s4 + $0x70] sm:$0xff] }
   0xd   :  { %456 = vmatprep.subr.bf16.mxu0 %v484_v0  ;;  %437 = vmatpush3.bf16.msra.mxu1 %v436_v22  ;;  %v472_v52 = vpack.c.bf16 %v127_v49, %v126_v47  ;;  %v129_v54 = vld [vmem:[%s673_s4 + $0x78] sm:$0xff]  ;;  %v451_v55 = vpack.c.bf16 %v145_v51, %v144_v50  ;;  %v27_v57 = vld [vmem:[%s675_s1] sm:$0x3] }
   0xe   :  { %438 = vmatprep.subr.bf16.mxu1 %v484_v0  ;;  %v475_v56 = vpack.c.bf16 %v129_v54, %v128_v53  ;;  %v300_v58 = vld [vmem:[%s676_s3] ss:$0 sm:$0xff] }
   0xf   :  { %v302_v2 = vld [vmem:[%s677_s6] ss:$0 sm:$0xff] }
  0x10   :  { %458 = vmatpush3.bf16.msra.mxu0 %v457_v25 }
  0x11   :  { %459 = vmatprep.subr.bf16.mxu0 %v484_v0  ;;  %440 = vmatpush3.bf16.msra.mxu1 %v439_v28 }
  0x12   :  { %441 = vmatprep.subr.bf16.mxu1 %v484_v0 }
  0x14   :  { %461 = vmatpush3.bf16.msra.mxu0 %v460_v31 }
  0x15   :  { %462 = vmatprep.subr.bf16.mxu0 %v484_v0  ;;  %443 = vmatpush3.bf16.msra.mxu1 %v442_v34 }
  0x16   :  { %444 = vmatprep.subr.bf16.mxu1 %v484_v0 }
  0x18   :  { %464 = vmatpush3.bf16.msra.mxu0 %v463_v35 }
  0x19   :  { %465 = vmatprep.subr.bf16.mxu0 %v484_v0  ;;  %446 = vmatpush3.bf16.msra.mxu1 %v445_v41 }
  0x1a   :  { %447 = vmatprep.subr.bf16.mxu1 %v484_v0 }
  0x1c   :  { %467 = vmatpush3.bf16.msra.mxu0 %v466_v38 }
  0x1d   :  { %468 = vmatprep.subr.bf16.mxu0 %v484_v0  ;;  %449 = vmatpush3.bf16.msra.mxu1 %v448_v48 }
  0x1e   :  { %450 = vmatprep.subr.bf16.mxu1 %v484_v0 }
  0x20   :  { %470 = vmatpush3.bf16.msra.mxu0 %v469_v44 }
  0x21   :  { %471 = vmatprep.subr.bf16.mxu0 %v484_v0  ;;  %452 = vmatpush3.bf16.msra.mxu1 %v451_v55 }
  0x24   :  { %473 = vmatpush3.bf16.msra.mxu0 %v472_v52  ;;  %386 = vmatmul.mubr.f32.vlgmr.msra.gmra.mrb[0].mxu1 %v27_v57 }
  0x25   :  { %474 = vmatprep.subr.bf16.mxu0 %v484_v0 }
  0x28   :  { %476 = vmatpush3.bf16.msra.mxu0 %v475_v56 }
  0xde   :  { %v109_v59 = vpop.f32.mrb[0].mxu0 }
  0xdf   :  { %v110_v60 = vadd.f32 %v300_v58, %v109_v59  ;;  %v352_v61 = vpop.f32.mrb[1].mxu0 }
  0xe1   :  { %480 = vtanh.f32 %v110_v60 }
  0xeb   :  { %v481_v62 = vpop.eup %480 }
  0xec   :  { %421 = vmatmul.mubr.f32.vlgmr.msra.gmra.mrb[2].mxu0 %v481_v62 }
  0xf7   :  { %v212_v63 = vpop.f32.mrb[0].mxu1 }
  0xf8   :  { %v387_v1 = vpop.f32.mrb[1].mxu1 }
 0x1bf   :  { %v282_v0 = vpop.f32.mrb[2].mxu0 }
 0x1c0   :  { %v283_v3 = vadd.f32 %v282_v0, %v212_v63  ;;  %v422_v4 = vpop.f32.mrb[3].mxu0 }
 0x1c2   :  { %v293_v5 = vadd.f32 %v302_v2, %v283_v3 }
 0x1c4   :  { %482 = vtanh.f32 %v293_v5 }
 0x1ce   :  { %v483_v6 = vpop.eup %482 }
 0x1cf   :  { %295 = vst [vmem:[%s678_s7] sm:$0x3] %v483_v6 }

</bundles_post_ra>
